<compile_context>
chip_gen: v6e
topology: v6e:2x2x1
jax: 0.10.0
libtpu: 0.0.40
codegen_flags: <defaults>
</compile_context>

<pallas_src>
import functools

import jax
import jax.numpy as jnp
import numpy as np
from jax.experimental import pallas as pl
from jax.experimental.pallas import tpu as pltpu


def _round_up(x, m):
    return int((x + m - 1) // m * m)


# ----------------------------- Pallas kernel --------------------------------
def _make_cnn_kernel(t_pad, kmax, fc_pad):
    """Kernel closed over static sizes.

    Ref order:
      x_ref     (TB, Lp, D)        embeddings (time-padded), compute dtype
      wf_ref    (kmax*D, F*Cp)     fused, zero-padded im2col conv weight
      bf_ref    (1, F*Cp)          fused conv bias (f32, zero in padded cols)
      mask_ref  (T_pad, F*Cp)      precomputed 0/1 validity mask (f32)
      lw_ref    (F*Cp, Op)         linear weight (transposed, zero-padded)
      lb_ref    (1, Op)            linear bias (f32, zero-padded)
      out_ref   (TB, Op)
    """

    def kernel(x_ref, wf_ref, bf_ref, mask_ref, lw_ref, lb_ref, out_ref):
        tb = x_ref.shape[0]
        d = x_ref.shape[2]

        # im2col slab: (TB, T_pad, kmax*D) from kmax shifted time windows.
        # kmax*D is lane-dense (128) at the tested sizes.
        # TODO(synk): for production D >= 128, replace the slab concat with an
        # unrolled per-tap accumulate (kmax matmuls (TB*T_pad, D)x(D, F*Cp)
        # into an f32 scratch) to cut peak VMEM ~kmax x on v7x's 64 MiB.
        slab = jnp.concatenate(
            [x_ref[:, pl.ds(j, t_pad), :] for j in range(kmax)], axis=-1)
        slab2 = slab.reshape(tb * t_pad, kmax * d)        # T_pad % 8 == 0 -> layout no-op

        # One fused MXU matmul for all filters and the whole batch tile.
        conv = jnp.dot(slab2, wf_ref[...], preferred_element_type=jnp.float32)
        conv = jnp.maximum(conv + bf_ref[...], 0.0)        # bias + ReLU (f32 epilogue)

        # Zero out time steps past each column's valid conv length.  ReLU
        # output is >= 0, so zeroing is neutral for the subsequent max-pool.
        conv = conv.reshape(tb, t_pad, fc_pad) * mask_ref[...][None, :, :]
        pooled = jnp.max(conv, axis=1)                     # (TB, F*Cp)

        out = jnp.dot(pooled.astype(lw_ref.dtype), lw_ref[...],
                      preferred_element_type=jnp.float32) + lb_ref[...]
        out_ref[...] = out.astype(out_ref.dtype)           # lane-dense store (Op = 128k)

    return kernel


def cnn_forward(x_tokens, emb_table, conv_params, linear_w_t, linear_b,
                filter_sizes, compute_dtype=jnp.bfloat16):
    """JAX glue + single gridded Pallas call.

    x_tokens : (B, L) int32
    emb_table: (V, D) f32 fused embedding table (gcn ++ pretrained)
    conv_params: list of (w (k, D, C), b (1, C)) per filter size
    linear_w_t: (F*C, O), linear_b: (1, O)
    compute_dtype: jnp.bfloat16 (default; f32 accumulation + f32 epilogue) or
                   jnp.float32 (bit-exact vs the f32 reference).
    """
    filter_sizes = tuple(int(k) for k in filter_sizes)
    kmin, kmax = min(filter_sizes), max(filter_sizes)
    b, seq_len = x_tokens.shape
    d = emb_table.shape[-1]
    c = conv_params[0][0].shape[-1]
    fc = len(filter_sizes) * c
    num_classes = linear_w_t.shape[-1]

    fc_pad = _round_up(fc, 128)                # lane-dense feature dim
    o_pad = _round_up(num_classes, 128)        # lane-dense output dim

    t_max = seq_len - kmin + 1                 # longest conv output length
    t_pad = _round_up(t_max, 8)                # sublane-aligned time axis
    lp = t_pad + kmax - 1                      # padded seq so every window exists

    # ---- batch tiling: big tiles, >=2 grid steps when the batch allows it ----
    b_pad8 = _round_up(b, 8)
    if b_pad8 >= 64:
        tb = 32                                # M = TB*T_pad rows into the MXU
    elif b_pad8 >= 16:
        half = b_pad8 // 2
        tb = half if half % 8 == 0 else 8      # keep >=2 steps for v7x's 2 TCs
    else:
        tb = b_pad8                            # tiny batch: single step
    b_pad = _round_up(b_pad8, tb)
    grid = (b_pad // tb,)

    # ---- embedding gather with the pad fused in -----------------------------
    # Padded (batch/time) positions gather row 0 of the table; that is harmless
    # because everything they could influence is zero-weighted (padded conv
    # taps), masked (invalid time steps) or sliced away (padded batch rows).
    # TODO(synk): move the gather in-kernel (PrefetchScalarGridSpec with token
    # ids in SMEM + per-row DMA from the HBM table) to drop the (B, Lp, D) HBM
    # round trip entirely at large vocab/seq.
    tok = jnp.pad(x_tokens, ((0, b_pad - b), (0, lp - seq_len)))
    x_emb = jnp.take(emb_table, tok, axis=0).astype(compute_dtype)   # (Bp, Lp, D)

    # ---- fuse all filters into one zero-padded im2col weight ----------------
    w_parts, b_parts, t_valid = [], [], []
    for (w, bias), k in zip(conv_params, filter_sizes):
        w_k = jnp.pad(w, ((0, kmax - k), (0, 0), (0, 0)))             # (kmax, D, C)
        w_parts.append(w_k.reshape(kmax * d, c))
        b_parts.append(bias)
        t_valid.append(np.full((c,), seq_len - k + 1, np.int32))
    w_fused = jnp.concatenate(w_parts, axis=-1)                       # (kmax*D, F*C)
    w_fused = jnp.pad(w_fused, ((0, 0), (0, fc_pad - fc))).astype(compute_dtype)
    b_fused = jnp.pad(jnp.concatenate(b_parts, axis=-1),
                      ((0, 0), (0, fc_pad - fc))).astype(jnp.float32)  # (1, F*Cp)

    # Precomputed validity mask (glue, not per grid step); padded cols = 0.
    t_valid = np.concatenate(t_valid + [np.zeros((fc_pad - fc,), np.int32)])
    mask_np = (np.arange(t_pad)[:, None] < t_valid[None, :]).astype(np.float32)
    mask = jnp.asarray(mask_np)                                       # (T_pad, F*Cp)

    lw = jnp.pad(linear_w_t, ((0, fc_pad - fc), (0, o_pad - num_classes))
                 ).astype(compute_dtype)                              # (F*Cp, Op)
    lb = jnp.pad(linear_b, ((0, 0), (0, o_pad - num_classes))).astype(jnp.float32)

    # ---- VMEM budget (double-buffered x tile + weights + intermediates) -----
    cd = jnp.dtype(compute_dtype).itemsize
    est = (2 * tb * lp * d * cd                       # x tile, double buffered
           + kmax * d * fc_pad * cd                   # fused conv weight
           + fc_pad * o_pad * cd                      # linear weight
           + (t_pad + 2) * fc_pad * 4 + o_pad * 4     # bias / mask / lb
           + tb * t_pad * kmax * d * cd               # im2col slab
           + 2 * tb * t_pad * fc_pad * 4              # conv intermediate
           + 2 * tb * o_pad * 4)                      # output tile
    vmem_limit = int(min(max(2 * est, 32 << 20), 64 << 20))

    kernel = _make_cnn_kernel(t_pad, kmax, fc_pad)

    out = pl.pallas_call(
        kernel,
        out_shape=jax.ShapeDtypeStruct((b_pad, o_pad), jnp.float32),
        grid_spec=pltpu.PrefetchScalarGridSpec(
            num_scalar_prefetch=0,
            grid=grid,
            in_specs=[
                # NOTE: if xprof ever shows exposed DMA latency on the x tile,
                # add pipeline_mode=pl.Buffered(3) here only (weights are
                # constant-index and stay at default buffering).
                pl.BlockSpec((tb, lp, d), lambda i: (i, 0, 0)),         # embeddings (batch-tiled)
                pl.BlockSpec((kmax * d, fc_pad), lambda i: (0, 0)),     # fused conv weight
                pl.BlockSpec((1, fc_pad), lambda i: (0, 0)),            # fused conv bias
                pl.BlockSpec((t_pad, fc_pad), lambda i: (0, 0)),        # validity mask
                pl.BlockSpec((fc_pad, o_pad), lambda i: (0, 0)),        # linear weight
                pl.BlockSpec((1, o_pad), lambda i: (0, 0)),             # linear bias
            ],
            out_specs=pl.BlockSpec((tb, o_pad), lambda i: (i, 0)),
        ),
        compiler_params=pltpu.CompilerParams(
            dimension_semantics=("parallel",),
            vmem_limit_bytes=vmem_limit),
    )(x_emb, w_fused, b_fused, mask, lw, lb)

    return out[:b, :num_classes]


# ----------------------------- reference (plain JAX) ------------------------
def cnn_reference(x_tokens, emb_table, conv_params, linear_w_t, linear_b,
                  filter_sizes):
    x = jnp.take(emb_table, x_tokens, axis=0)                 # (B, L, D)
    feats = []
    for (w, bias), k in zip(conv_params, filter_sizes):
        seq_len = x.shape[1]
        t = seq_len - k + 1
        acc = jnp.zeros((x.shape[0], t, w.shape[-1]), jnp.float32)
        for j in range(k):
            acc = acc + jnp.einsum('bld,dc->blc', x[:, j:j + t, :], w[j])
        acc = jnp.maximum(acc + bias[None, :, :], 0.0)
        feats.append(jnp.max(acc, axis=1))                    # (B, C)
    h = jnp.concatenate(feats, axis=-1)
    return h @ linear_w_t + linear_b


# --------------------------------- main --------------------------------------
if __name__ == "__main__":
    # Small config consistent with the module's forward.
    B, L = 2, 8
    vocab_size = 50
    emb_dim, gcn_dim = 16, 16
    D = emb_dim + gcn_dim            # cnn_input_dim
    num_filters = 8                  # out_channel
    filter_sizes = (2, 3, 4)
    num_classes = 4

    key = jax.random.PRNGKey(0)
    keys = jax.random.split(key, 4 + 2 * len(filter_sizes))

    # "Pretrained" embedding tables (padding row 0 is just used as-is in forward).
    graph_embeddings = jax.random.normal(keys[0], (vocab_size, gcn_dim), jnp.float32) * 0.1
    pretrained_vecs = jax.random.normal(keys[1], (vocab_size, emb_dim), jnp.float32) * 0.1
    emb_table = jnp.concatenate([graph_embeddings, pretrained_vecs], axis=-1)  # gcn first

    # Conv2d(1, C, (k, D)) weights, stored directly as (k, D, C); bias (1, C).
    conv_params = []
    for i, k in enumerate(filter_sizes):
        fan_in = k * D
        bound = 1.0 / np.sqrt(fan_in)
        w = jax.random.uniform(keys[2 + 2 * i], (k, D, num_filters),
                               jnp.float32, -bound, bound)
        bias = jax.random.uniform(keys[3 + 2 * i], (1, num_filters),
                                  jnp.float32, -bound, bound)
        conv_params.append((w, bias))

    # Linear(len(fs)*C, num_classes), stored transposed as (F*C, O); bias (1, O).
    feat_dim = len(filter_sizes) * num_filters
    lbound = 1.0 / np.sqrt(feat_dim)
    linear_w_t = jax.random.uniform(keys[-2], (feat_dim, num_classes),
                                    jnp.float32, -lbound, lbound)
    linear_b = jax.random.uniform(keys[-1], (1, num_classes),
                                  jnp.float32, -lbound, lbound)

    # Token ids input (B, L).
    x_tokens = jax.random.randint(jax.random.PRNGKey(42), (B, L), 0, vocab_size,
                                  dtype=jnp.int32)

    ref = cnn_reference(x_tokens, emb_table, conv_params, linear_w_t, linear_b,
                        filter_sizes)

    # Exact path (f32 compute) — tight tolerance.
    fwd_f32 = jax.jit(functools.partial(cnn_forward, filter_sizes=filter_sizes,
                                        compute_dtype=jnp.float32))
    out_f32 = jax.block_until_ready(
        fwd_f32(x_tokens, emb_table, conv_params, linear_w_t, linear_b))
    np.testing.assert_allclose(np.asarray(out_f32), np.asarray(ref),
                               rtol=1e-4, atol=1e-4)

    # Default fast path (bf16 inputs/weights, f32 accumulation + epilogue).
    fwd_bf16 = jax.jit(functools.partial(cnn_forward, filter_sizes=filter_sizes))
    out_bf16 = jax.block_until_ready(
        fwd_bf16(x_tokens, emb_table, conv_params, linear_w_t, linear_b))
    np.testing.assert_allclose(np.asarray(out_bf16), np.asarray(ref),
                               rtol=5e-2, atol=5e-2)

    print("KERNEL_OK")
</pallas_src>

<mosaic_0001>
module attributes {stable_mosaic.version = 11 : i64} {
  func.func @kernel(%arg0: i32, %arg1: memref<8x11x32xf32, #tpu.memory_space<vmem>>, %arg2: memref<128x128xf32, #tpu.memory_space<vmem>>, %arg3: memref<1x128xf32, #tpu.memory_space<vmem>>, %arg4: memref<8x128xf32, #tpu.memory_space<vmem>>, %arg5: memref<128x128xf32, #tpu.memory_space<vmem>>, %arg6: memref<1x128xf32, #tpu.memory_space<vmem>>, %arg7: memref<8x128xf32, #tpu.memory_space<vmem>>) attributes {dimension_semantics = [#tpu.dimension_semantics<parallel>], iteration_bounds = array<i64: 1>, scalar_prefetch = 0 : i64, scratch_operands = 0 : i64, tpu.core_type = #tpu.core_type<tc>, window_params = [{transform_indices = @transform_0, window_bounds = array<i64: 8, 11, 32>}, {pipeline_mode = #tpu.pipeline_mode<synchronous>, transform_indices = @transform_1, window_bounds = array<i64: 128, 128>}, {pipeline_mode = #tpu.pipeline_mode<synchronous>, transform_indices = @transform_2, window_bounds = array<i64: 1, 128>}, {pipeline_mode = #tpu.pipeline_mode<synchronous>, transform_indices = @transform_3, window_bounds = array<i64: 8, 128>}, {pipeline_mode = #tpu.pipeline_mode<synchronous>, transform_indices = @transform_4, window_bounds = array<i64: 128, 128>}, {pipeline_mode = #tpu.pipeline_mode<synchronous>, transform_indices = @transform_5, window_bounds = array<i64: 1, 128>}, {transform_indices = @transform_6, window_bounds = array<i64: 8, 128>}]} {
    %c0 = arith.constant 0 : index
    %c0_0 = arith.constant 0 : index
    %c0_1 = arith.constant 0 : index
    %0 = vector.load %arg1[%c0, %c0_0, %c0_1] : memref<8x11x32xf32, #tpu.memory_space<vmem>>, vector<8x8x32xf32>
    %c0_2 = arith.constant 0 : index
    %c1 = arith.constant 1 : index
    %c0_3 = arith.constant 0 : index
    %1 = vector.load %arg1[%c0_2, %c1, %c0_3] : memref<8x11x32xf32, #tpu.memory_space<vmem>>, vector<8x8x32xf32>
    %c0_4 = arith.constant 0 : index
    %c2 = arith.constant 2 : index
    %c0_5 = arith.constant 0 : index
    %2 = vector.load %arg1[%c0_4, %c2, %c0_5] : memref<8x11x32xf32, #tpu.memory_space<vmem>>, vector<8x8x32xf32>
    %c0_6 = arith.constant 0 : index
    %c3 = arith.constant 3 : index
    %c0_7 = arith.constant 0 : index
    %3 = vector.load %arg1[%c0_6, %c3, %c0_7] : memref<8x11x32xf32, #tpu.memory_space<vmem>>, vector<8x8x32xf32>
    %4 = tpu.concatenate %0, %1, %2, %3 in 2 : vector<8x8x32xf32>, vector<8x8x32xf32>, vector<8x8x32xf32>, vector<8x8x32xf32> -> vector<8x8x128xf32>
    %5 = vector.shape_cast %4 : vector<8x8x128xf32> to vector<64x128xf32>
    %c0_8 = arith.constant 0 : index
    %c0_9 = arith.constant 0 : index
    %6 = vector.load %arg2[%c0_8, %c0_9] : memref<128x128xf32, #tpu.memory_space<vmem>>, vector<128x128xf32>
    %cst = arith.constant dense<0.000000e+00> : vector<64x128xf32>
    %7 = tpu.matmul %5, %6, %cst {dimension_numbers = #tpu.dot_dimension_numbers<[1], [0], [0], [1], [0, 0, 1, 1], [], []>} : vector<64x128xf32>, vector<128x128xf32>, vector<64x128xf32> -> vector<64x128xf32>
    %c0_10 = arith.constant 0 : index
    %c0_11 = arith.constant 0 : index
    %8 = vector.load %arg3[%c0_10, %c0_11] : memref<1x128xf32, #tpu.memory_space<vmem>>, vector<1x128xf32>
    %9 = vector.broadcast %8 : vector<1x128xf32> to vector<64x128xf32>
    %10 = arith.addf %7, %9 : vector<64x128xf32>
    %cst_12 = arith.constant 0.000000e+00 : f32
    %11 = vector.broadcast %cst_12 : f32 to vector<64x128xf32>
    %12 = arith.maximumf %10, %11 : vector<64x128xf32>
    %13 = vector.shape_cast %12 : vector<64x128xf32> to vector<8x8x128xf32>
    %c0_13 = arith.constant 0 : index
    %c0_14 = arith.constant 0 : index
    %14 = vector.load %arg4[%c0_13, %c0_14] : memref<8x128xf32, #tpu.memory_space<vmem>>, vector<8x128xf32>
    %15 = vector.shape_cast %14 : vector<8x128xf32> to vector<1x8x128xf32>
    %16 = vector.broadcast %15 : vector<1x8x128xf32> to vector<8x8x128xf32>
    %17 = arith.mulf %13, %16 : vector<8x8x128xf32>
    %cst_15 = arith.constant dense<0xFF800000> : vector<8x128xf32>
    %18 = vector.multi_reduction <maximumf>, %17, %cst_15 [1] : vector<8x8x128xf32> to vector<8x128xf32>
    %c0_16 = arith.constant 0 : index
    %c0_17 = arith.constant 0 : index
    %19 = vector.load %arg5[%c0_16, %c0_17] : memref<128x128xf32, #tpu.memory_space<vmem>>, vector<128x128xf32>
    %cst_18 = arith.constant dense<0.000000e+00> : vector<8x128xf32>
    %20 = tpu.matmul %18, %19, %cst_18 {dimension_numbers = #tpu.dot_dimension_numbers<[1], [0], [0], [1], [0, 0, 1, 1], [], []>} : vector<8x128xf32>, vector<128x128xf32>, vector<8x128xf32> -> vector<8x128xf32>
    %c0_19 = arith.constant 0 : index
    %c0_20 = arith.constant 0 : index
    %21 = vector.load %arg6[%c0_19, %c0_20] : memref<1x128xf32, #tpu.memory_space<vmem>>, vector<1x128xf32>
    %22 = vector.broadcast %21 : vector<1x128xf32> to vector<8x128xf32>
    %23 = arith.addf %20, %22 : vector<8x128xf32>
    %c0_21 = arith.constant 0 : index
    %c0_22 = arith.constant 0 : index
    %24 = vector.load %arg7[%c0_21, %c0_22] : memref<8x128xf32, #tpu.memory_space<vmem>>, vector<8x128xf32>
    tpu.vector_store %arg7[%c0_21, %c0_22], %23 {strides = array<i32>} : memref<8x128xf32, #tpu.memory_space<vmem>>, vector<8x128xf32>,
    return
  }
  func.func @transform_0(%arg0: i32) -> (i32, i32, i32) {
    %c0_i32 = arith.constant 0 : i32
    %c0_i32_0 = arith.constant 0 : i32
    %c0_i32_1 = arith.constant 0 : i32
    return %arg0, %c0_i32, %c0_i32_0 : i32, i32, i32
  }
  func.func @transform_1(%arg0: i32) -> (i32, i32) {
    %c0_i32 = arith.constant 0 : i32
    %c0_i32_0 = arith.constant 0 : i32
    %c0_i32_1 = arith.constant 0 : i32
    return %c0_i32, %c0_i32_0 : i32, i32
  }
  func.func @transform_2(%arg0: i32) -> (i32, i32) {
    %c0_i32 = arith.constant 0 : i32
    %c0_i32_0 = arith.constant 0 : i32
    %c0_i32_1 = arith.constant 0 : i32
    return %c0_i32, %c0_i32_0 : i32, i32
  }
  func.func @transform_3(%arg0: i32) -> (i32, i32) {
    %c0_i32 = arith.constant 0 : i32
    %c0_i32_0 = arith.constant 0 : i32
    %c0_i32_1 = arith.constant 0 : i32
    return %c0_i32, %c0_i32_0 : i32, i32
  }
  func.func @transform_4(%arg0: i32) -> (i32, i32) {
    %c0_i32 = arith.constant 0 : i32
    %c0_i32_0 = arith.constant 0 : i32
    %c0_i32_1 = arith.constant 0 : i32
    return %c0_i32, %c0_i32_0 : i32, i32
  }
  func.func @transform_5(%arg0: i32) -> (i32, i32) {
    %c0_i32 = arith.constant 0 : i32
    %c0_i32_0 = arith.constant 0 : i32
    %c0_i32_1 = arith.constant 0 : i32
    return %c0_i32, %c0_i32_0 : i32, i32
  }
  func.func @transform_6(%arg0: i32) -> (i32, i32) {
    %c0_i32 = arith.constant 0 : i32
    %c0_i32_0 = arith.constant 0 : i32
    return %arg0, %c0_i32 : i32, i32
  }
}

</mosaic_0001>

<bundles_post_ra>
// kernel: cnn_forward.1
= control target key start
LH: loop header
LB: loop body
LE: loop exit
PB: predicated region body
PF: predicated region fallthrough
CT: control target
= control target key end

     0   :  { %s679_s13 = smov 32   ;;  %s680_s14 = smov 96   ;;  %vm151_vm0 = vcmask 261120   ;;  %vm160_vm1 = vcmask 523264   ;;  %vm169_vm2 = vcmask 785408   ;;  %vm683_vm3 = vmmov 0   ;;  %s959_s0 = inlined_call_operand.vmem [shape: f32[8,11,32], index: 0, kind: input, shape index: {}]   ;;  %s960_s1 = inlined_call_operand.vmem [shape: f32[128,128], index: 1, kind: input, shape index: {}]   ;;  %s961_s4 = inlined_call_operand.vmem [shape: f32[128,128], index: 4, kind: input, shape index: {}]   ;;  %s962_s2 = inlined_call_operand.vmem [shape: f32[1,128], index: 2, kind: input, shape index: {}]   ;;  %s963_s3 = inlined_call_operand.vmem [shape: f32[8,128], index: 3, kind: input, shape index: {}]   ;;  %s964_s5 = inlined_call_operand.vmem [shape: f32[1,128], index: 5, kind: input, shape index: {}]   ;;  %s965_s6 = inlined_call_operand.vmem [shape: f32[8,128], index: 6, kind: output, shape index: {}]  }
   0x1   :  { %v31_v0 = vld [vmem:[%s959_s0 + $0x1] sm:$0xff]  ;;  %v32_v1 = vld [vmem:[%s959_s0 + $0x11] sm:$0xff]  ;;  %s681_s23 = smov 64   ;;  %vm402_vm4 = vcmask 1041409   ;;  %vm404_vm5 = vcmask 1042434   ;;  %vm406_vm6 = vcmask 1043459  }
   0x2   :  { %v47_v2 = vld [vmem:[%s959_s0 + $0x3] sm:$0xff]  ;;  %v619_v3 = vpack.i.bf16 %v32_v1, %v31_v0  ;;  %v48_v4 = vld [vmem:[%s959_s0 + $0x13] sm:$0xff]  ;;  %vm408_vm7 = vcmask 1044484   ;;  %vm410_vm8 = vcmask 1045509   ;;  %vm412_vm9 = vcmask 1046534  }
   0x3   :  { %v39_v5 = vld [vmem:[%s959_s0 + $0x2] sm:$0xff]  ;;  %v40_v6 = vld [vmem:[%s959_s0 + $0x12] sm:$0xff]  ;;  %v629_v7 = vpack.i.bf16 %v48_v4, %v47_v2  ;;  %vm414_vm10 = vcmask 1047559  }
   0x4   :  { %v33_v8 = vld [vmem:[%s959_s0 + $0x21] sm:$0xff]  ;;  %v34_v9 = vld [vmem:[%s959_s0 + $0x31] sm:$0xff]  ;;  %620 = vrot.lane.b32.xlu0 %v619_v3, %s679_s13  ;;  %v624_v10 = vpack.i.bf16 %v40_v6, %v39_v5 }
   0x5   :  { %630 = vrot.lane.b32.xlu1 %v629_v7, %s680_s14  ;;  %v634_v11 = vpack.i.bf16 %v34_v9, %v33_v8  ;;  %v41_v12 = vld [vmem:[%s959_s0 + $0x22] sm:$0xff]  ;;  %v42_v13 = vld [vmem:[%s959_s0 + $0x32] sm:$0xff] }
   0x6   :  { %v49_v14 = vld [vmem:[%s959_s0 + $0x23] sm:$0xff]  ;;  %v50_v15 = vld [vmem:[%s959_s0 + $0x33] sm:$0xff]  ;;  %v639_v16 = vpack.i.bf16 %v42_v13, %v41_v12 }
   0x7   :  { %v35_v17 = vld [vmem:[%s959_s0 + $0x41] sm:$0xff]  ;;  %v644_v18 = vpack.i.bf16 %v50_v15, %v49_v14  ;;  %v36_v19 = vld [vmem:[%s959_s0 + $0x51] sm:$0xff] }
   0x8   :  { %625 = vrot.lane.b32.xlu0 %v624_v10, %s681_s23  ;;  %v193_v20 = vld [vmem:[%s960_s1 + $0x78] sm:$0xff]  ;;  %v192_v21 = vld [vmem:[%s960_s1 + $0x70] sm:$0xff]  ;;  %v43_v22 = vld [vmem:[%s959_s0 + $0x42] sm:$0xff]  ;;  %v649_v25 = vpack.i.bf16 %v36_v19, %v35_v17 }
   0x9   :  { %635 = vrot.lane.b32.xlu1 %v634_v11, %s679_s13  ;;  %v44_v23 = vld [vmem:[%s959_s0 + $0x52] sm:$0xff]  ;;  %535 = vmatprep.subr.mxu0 %v193_v20  ;;  %v191_v24 = vld [vmem:[%s960_s1 + $0x68] sm:$0xff]  ;;  %v190_v29 = vld [vmem:[%s960_s1 + $0x60] sm:$0xff] }
   0xa   :  { %536 = vmatpush3.msra.mxu0 %v193_v20  ;;  %v654_v26 = vpack.i.bf16 %v44_v23, %v43_v22  ;;  %v51_v27 = vld [vmem:[%s959_s0 + $0x43] sm:$0xff]  ;;  %v52_v28 = vld [vmem:[%s959_s0 + $0x53] sm:$0xff] }
   0xb   :  { %537 = vmatprep.subr.mxu0 %v192_v21  ;;  %v37_v30 = vld [vmem:[%s959_s0 + $0x61] sm:$0xff]  ;;  %v38_v31 = vld [vmem:[%s959_s0 + $0x71] sm:$0xff]  ;;  %v659_v33 = vpack.i.bf16 %v52_v28, %v51_v27 }
   0xc   :  { %640 = vrot.lane.b32.xlu0 %v639_v16, %s681_s23  ;;  %538 = vmatpush3.msra.mxu0 %v192_v21  ;;  %v189_v32 = vld [vmem:[%s960_s1 + $0x58] sm:$0xff]  ;;  %v664_v34 = vpack.i.bf16 %v38_v31, %v37_v30  ;;  %v45_v35 = vld [vmem:[%s959_s0 + $0x62] sm:$0xff]  ;;  %v188_v37 = vld [vmem:[%s960_s1 + $0x50] sm:$0xff] }
   0xd   :  { %645 = vrot.lane.b32.xlu1 %v644_v18, %s680_s14  ;;  %539 = vmatprep.subr.mxu0 %v191_v24  ;;  %v46_v36 = vld [vmem:[%s959_s0 + $0x72] sm:$0xff]  ;;  %v53_v38 = vld [vmem:[%s959_s0 + $0x63] sm:$0xff] }
   0xe   :  { %540 = vmatpush3.msra.mxu0 %v191_v24  ;;  %v54_v39 = vld [vmem:[%s959_s0 + $0x73] sm:$0xff]  ;;  %v187_v40 = vld [vmem:[%s960_s1 + $0x48] sm:$0xff]  ;;  %v669_v41 = vpack.i.bf16 %v46_v36, %v45_v35  ;;  %v186_v43 = vld [vmem:[%s960_s1 + $0x40] sm:$0xff] }
   0xf   :  { %541 = vmatprep.subr.mxu0 %v190_v29  ;;  %v674_v42 = vpack.i.bf16 %v54_v39, %v53_v38  ;;  %v185_v44 = vld [vmem:[%s960_s1 + $0x38] sm:$0xff]  ;;  %v184_v45 = vld [vmem:[%s960_s1 + $0x30] sm:$0xff]  ;;  %v183_v46 = vld [vmem:[%s960_s1 + $0x28] sm:$0xff] }
  0x10   :  { %650 = vrot.lane.b32.xlu0 %v649_v25, %s679_s13  ;;  %542 = vmatpush3.msra.mxu0 %v190_v29  ;;  %v182_v47 = vld [vmem:[%s960_s1 + $0x20] sm:$0xff]  ;;  %v181_v48 = vld [vmem:[%s960_s1 + $0x18] sm:$0xff]  ;;  %v180_v49 = vld [vmem:[%s960_s1 + $0x10] sm:$0xff] }
  0x11   :  { %655 = vrot.lane.b32.xlu1 %v654_v26, %s681_s23  ;;  %543 = vmatprep.subr.mxu0 %v189_v32  ;;  %v179_v50 = vld [vmem:[%s960_s1 + $0x8] sm:$0xff]  ;;  %v178_v51 = vld [vmem:[%s960_s1] sm:$0xff]  ;;  %v24_v57 = vld [vmem:[%s959_s0 + $0x10] sm:$0xff] }
  0x12   :  { %544 = vmatpush3.msra.mxu0 %v189_v32  ;;  %v23_v56 = vld [vmem:[%s959_s0] sm:$0xff]  ;;  %v26_v7 = vld [vmem:[%s959_s0 + $0x30] sm:$0xff] }
  0x13   :  { %545 = vmatprep.subr.mxu0 %v188_v37  ;;  %v25_v6 = vld [vmem:[%s959_s0 + $0x20] sm:$0xff]  ;;  %v28_v24 = vld [vmem:[%s959_s0 + $0x50] sm:$0xff] }
  0x14   :  { %660 = vrot.lane.b32.xlu0 %v659_v33, %s680_s14  ;;  %546 = vmatpush3.msra.mxu0 %v188_v37  ;;  %v27_v23 = vld [vmem:[%s959_s0 + $0x40] sm:$0xff] }
  0x15   :  { %665 = vrot.lane.b32.xlu1 %v664_v34, %s679_s13  ;;  %547 = vmatprep.subr.mxu0 %v187_v40 }
  0x16   :  { %548 = vmatpush3.msra.mxu0 %v187_v40 }
  0x17   :  { %549 = vmatprep.subr.mxu0 %v186_v43 }
  0x18   :  { %670 = vrot.lane.b32.xlu0 %v669_v41, %s681_s23  ;;  %550 = vmatpush3.msra.mxu0 %v186_v43  ;;  %v30_v43 = vld [vmem:[%s959_s0 + $0x70] sm:$0xff] }
  0x19   :  { %675 = vrot.lane.b32.xlu1 %v674_v42, %s680_s14  ;;  %551 = vmatprep.subr.mxu0 %v185_v44  ;;  %v29_v42 = vld [vmem:[%s959_s0 + $0x60] sm:$0xff] }
  0x1a   :  { %552 = vmatpush3.msra.mxu0 %v185_v44 }
  0x1b   :  { %553 = vmatprep.subr.mxu0 %v184_v45 }
  0x1c   :  { %554 = vmatpush3.msra.mxu0 %v184_v45 }
  0x1d   :  { %555 = vmatprep.subr.mxu0 %v183_v46 }
  0x1e   :  { %556 = vmatpush3.msra.mxu0 %v183_v46 }
  0x1f   :  { %557 = vmatprep.subr.mxu0 %v182_v47 }
  0x20   :  { %558 = vmatpush3.msra.mxu0 %v182_v47 }
  0x21   :  { %559 = vmatprep.subr.mxu0 %v181_v48 }
  0x22   :  { %560 = vmatpush3.msra.mxu0 %v181_v48 }
  0x23   :  { %561 = vmatprep.subr.mxu0 %v180_v49 }
  0x24   :  { %562 = vmatpush3.msra.mxu0 %v180_v49 }
  0x25   :  { %563 = vmatprep.subr.mxu0 %v179_v50 }
  0x26   :  { %564 = vmatpush3.msra.mxu0 %v179_v50 }
  0x27   :  { %565 = vmatprep.subr.mxu0 %v178_v51 }
  0x28   :  { %566 = vmatpush3.msra.mxu0 %v178_v51 }
  0x76   :  { %v621_v52 = vpop.permute.xlu0 %620 }
  0x77   :  { %v631_v53 = vpop.permute.xlu1 %630  ;;  %v623_v54 = vunpack.i.h.bf16 %v621_v52  ;;  %v622_v55 = vunpack.i.l.bf16 %v621_v52 }
  0x78   :  { %v633_v59 = vunpack.i.h.bf16 %v631_v53  ;;  %v632_v60 = vunpack.i.l.bf16 %v631_v53 }
  0x79   :  { %v152_v2 = vsel %vm151_vm0, %v23_v56, %v622_v55  ;;  %v153_v3 = vsel %vm151_vm0, %v24_v57, %v623_v54  ;;  %v682_v56 = vmov 0.0   ;;  %v386_v57 = vld [vmem:[%s961_s4 + $0x78] sm:$0xff] }
  0x7a   :  { %v626_v58 = vpop.permute.xlu0 %625  ;;  %579 = vmatprep.subr.mxu1 %v682_v56  ;;  %611 = vmatprep.mubr.msk.f32.mxu1 %vm683_vm3, %v682_v56 }
  0x7b   :  { %v628_v61 = vunpack.i.h.bf16 %v626_v58  ;;  %v627_v62 = vunpack.i.l.bf16 %v626_v58  ;;  %v636_v63 = vpop.permute.xlu1 %635  ;;  %580 = vmatpush3.msra.mxu1 %v386_v57  ;;  %v385_v58 = vld [vmem:[%s961_s4 + $0x70] sm:$0xff] }
  0x7c   :  { %v638_v0 = vunpack.i.h.bf16 %v636_v63  ;;  %v637_v1 = vunpack.i.l.bf16 %v636_v63  ;;  %581 = vmatprep.subr.mxu1 %v682_v56  ;;  %v380_v63 = vld [vmem:[%s961_s4 + $0x48] sm:$0xff] }
  0x7d   :  { %v161_v4 = vsel %vm160_vm1, %v152_v2, %v627_v62  ;;  %v162_v5 = vsel %vm160_vm1, %v153_v3, %v628_v61  ;;  %582 = vmatpush3.msra.mxu1 %v385_v58  ;;  %v382_v61 = vld [vmem:[%s961_s4 + $0x58] sm:$0xff]  ;;  %v381_v62 = vld [vmem:[%s961_s4 + $0x50] sm:$0xff]  ;;  %v376_v3 = vld [vmem:[%s961_s4 + $0x28] sm:$0xff] }
  0x7e   :  { %v641_v8 = vpop.permute.xlu0 %640  ;;  %v170_v9 = vsel %vm169_vm2, %v161_v4, %v632_v60  ;;  %v171_v10 = vsel %vm169_vm2, %v162_v5, %v633_v59  ;;  %v154_v16 = vsel %vm151_vm0, %v25_v6, %v637_v1  ;;  %v155_v17 = vsel %vm151_vm0, %v26_v7, %v638_v0  ;;  %583 = vmatprep.subr.mxu1 %v682_v56  ;;  %v384_v59 = vld [vmem:[%s961_s4 + $0x68] sm:$0xff]  ;;  %v383_v60 = vld [vmem:[%s961_s4 + $0x60] sm:$0xff]  ;;  %v378_v1 = vld [vmem:[%s961_s4 + $0x38] sm:$0xff] }
  0x7f   :  { %v643_v11 = vunpack.i.h.bf16 %v641_v8  ;;  %v642_v12 = vunpack.i.l.bf16 %v641_v8  ;;  %v646_v13 = vpop.permute.xlu1 %645  ;;  %567 = vmatprep.mubr.f32.mxu0 %v170_v9  ;;  %584 = vmatpush3.msra.mxu1 %v384_v59  ;;  %v379_v0 = vld [vmem:[%s961_s4 + $0x40] sm:$0xff]  ;;  %v377_v2 = vld [vmem:[%s961_s4 + $0x30] sm:$0xff]  ;;  %v374_v5 = vld [vmem:[%s961_s4 + $0x18] sm:$0xff] }
  0x80   :  { %v648_v14 = vunpack.i.h.bf16 %v646_v13  ;;  %v647_v15 = vunpack.i.l.bf16 %v646_v13  ;;  %568 = vmatmul.mubr.f32.vlgmr.msra.gmra.mxu0 %v171_v10  ;;  %585 = vmatprep.subr.mxu1 %v682_v56  ;;  %v375_v4 = vld [vmem:[%s961_s4 + $0x20] sm:$0xff]  ;;  %v373_v6 = vld [vmem:[%s961_s4 + $0x10] sm:$0xff]  ;;  %v372_v7 = vld [vmem:[%s961_s4 + $0x8] sm:$0xff] }
  0x81   :  { %v163_v18 = vsel %vm160_vm1, %v154_v16, %v642_v12  ;;  %v164_v19 = vsel %vm160_vm1, %v155_v17, %v643_v11  ;;  %586 = vmatpush3.msra.mxu1 %v383_v60  ;;  %v371_v8 = vld [vmem:[%s961_s4] sm:$0xff] }
  0x82   :  { %v651_v20 = vpop.permute.xlu0 %650  ;;  %v172_v21 = vsel %vm169_vm2, %v163_v18, %v647_v15  ;;  %v173_v22 = vsel %vm169_vm2, %v164_v19, %v648_v14  ;;  %587 = vmatprep.subr.mxu1 %v682_v56  ;;  %v492_v9 = vld [vmem:[%s962_s2] ss:$0 sm:$0xff] }
  0x83   :  { %v653_v25 = vunpack.i.h.bf16 %v651_v20  ;;  %v652_v26 = vunpack.i.l.bf16 %v651_v20  ;;  %v656_v27 = vpop.permute.xlu1 %655  ;;  %570 = vmatprep.mubr.f32.mxu0 %v172_v21  ;;  %588 = vmatpush3.msra.mxu1 %v382_v61  ;;  %v314_v12 = vld [vmem:[%s963_s3] sm:$0xff] }
  0x84   :  { %v658_v28 = vunpack.i.h.bf16 %v656_v27  ;;  %v657_v29 = vunpack.i.l.bf16 %v656_v27  ;;  %571 = vmatmul.mubr.f32.gmra.mxu0 %v173_v22  ;;  %589 = vmatprep.subr.mxu1 %v682_v56 }
  0x85   :  { %v156_v30 = vsel %vm151_vm0, %v27_v23, %v652_v26  ;;  %v157_v31 = vsel %vm151_vm0, %v28_v24, %v653_v25  ;;  %590 = vmatpush3.msra.mxu1 %v381_v62 }
  0x86   :  { %v661_v32 = vpop.permute.xlu0 %660  ;;  %v165_v38 = vsel %vm160_vm1, %v156_v30, %v657_v29  ;;  %v166_v39 = vsel %vm160_vm1, %v157_v31, %v658_v28  ;;  %591 = vmatprep.subr.mxu1 %v682_v56 }
  0x87   :  { %v663_v33 = vunpack.i.h.bf16 %v661_v32  ;;  %v662_v34 = vunpack.i.l.bf16 %v661_v32  ;;  %v666_v35 = vpop.permute.xlu1 %665  ;;  %592 = vmatpush3.msra.mxu1 %v380_v63 }
  0x88   :  { %v668_v36 = vunpack.i.h.bf16 %v666_v35  ;;  %v667_v37 = vunpack.i.l.bf16 %v666_v35  ;;  %593 = vmatprep.subr.mxu1 %v682_v56 }
  0x89   :  { %v174_v40 = vsel %vm169_vm2, %v165_v38, %v662_v34  ;;  %v175_v41 = vsel %vm169_vm2, %v166_v39, %v663_v33  ;;  %594 = vmatpush3.msra.mxu1 %v379_v0 }
  0x8a   :  { %v671_v44 = vpop.permute.xlu0 %670  ;;  %573 = vmatprep.mubr.f32.mxu0 %v174_v40  ;;  %v158_v50 = vsel %vm151_vm0, %v29_v42, %v667_v37  ;;  %v159_v51 = vsel %vm151_vm0, %v30_v43, %v668_v36  ;;  %595 = vmatprep.subr.mxu1 %v682_v56 }
  0x8b   :  { %v673_v45 = vunpack.i.h.bf16 %v671_v44  ;;  %v672_v46 = vunpack.i.l.bf16 %v671_v44  ;;  %v676_v47 = vpop.permute.xlu1 %675  ;;  %574 = vmatmul.mubr.f32.gmra.mxu0 %v175_v41  ;;  %596 = vmatpush3.msra.mxu1 %v378_v1 }
  0x8c   :  { %v678_v48 = vunpack.i.h.bf16 %v676_v47  ;;  %v677_v49 = vunpack.i.l.bf16 %v676_v47  ;;  %597 = vmatprep.subr.mxu1 %v682_v56 }
  0x8d   :  { %v167_v52 = vsel %vm160_vm1, %v158_v50, %v672_v46  ;;  %v168_v53 = vsel %vm160_vm1, %v159_v51, %v673_v45  ;;  %598 = vmatpush3.msra.mxu1 %v377_v2 }
  0x8e   :  { %v176_v54 = vsel %vm169_vm2, %v167_v52, %v677_v49  ;;  %v177_v55 = vsel %vm169_vm2, %v168_v53, %v678_v48  ;;  %599 = vmatprep.subr.mxu1 %v682_v56 }
  0x8f   :  { %576 = vmatprep.mubr.f32.mxu0 %v176_v54  ;;  %600 = vmatpush3.msra.mxu1 %v376_v3 }
  0x90   :  { %577 = vmatmul.mubr.f32.gmra.mxu0 %v177_v55  ;;  %601 = vmatprep.subr.mxu1 %v682_v56 }
  0x91   :  { %602 = vmatpush3.msra.mxu1 %v375_v4 }
  0x92   :  { %603 = vmatprep.subr.mxu1 %v682_v56 }
  0x93   :  { %604 = vmatpush3.msra.mxu1 %v374_v5 }
  0x94   :  { %605 = vmatprep.subr.mxu1 %v682_v56 }
  0x95   :  { %606 = vmatpush3.msra.mxu1 %v373_v6 }
  0x96   :  { %607 = vmatprep.subr.mxu1 %v682_v56 }
  0x97   :  { %608 = vmatpush3.msra.mxu1 %v372_v7 }
  0x98   :  { %609 = vmatprep.subr.mxu1 %v682_v56 }
  0x99   :  { %610 = vmatpush3.msra.mxu1 %v371_v8 }
 0x140   :  { %v569_v10 = vpop.f32.mrf.mxu0 }
 0x141   :  { %v273_v11 = vadd.f32 %v569_v10, %v492_v9 }
 0x142   :  { %v267_v13 = vpop.f32.mrf.mxu0 }
 0x143   :  { %v307_v14 = vmax.f32 %v273_v11, 0.0  ;;  %v268_v15 = vadd.f32 %v492_v9, %v267_v13 }
 0x144   :  { %v572_v16 = vpop.f32.mrf.mxu0 }
 0x145   :  { %v316_v17 = vmul.f32 %v314_v12, %v307_v14  ;;  %v306_v18 = vmax.f32 %v268_v15, 0.0  ;;  %v283_v19 = vadd.f32 %v572_v16, %v492_v9 }
 0x146   :  { %v277_v20 = vpop.f32.mrf.mxu0 }
 0x147   :  { %v329_v21 = vrot.slane %v316_v17, 4  ;;  %v315_v22 = vmul.f32 %v314_v12, %v306_v18  ;;  %v309_v23 = vmax.f32 %v283_v19, 0.0  ;;  %v278_v24 = vadd.f32 %v492_v9, %v277_v20 }
 0x149   :  { %v330_v25 = vmax.f32 %v316_v17, %v329_v21  ;;  %v323_v26 = vrot.slane %v315_v22, 4  ;;  %v318_v27 = vmul.f32 %v314_v12, %v309_v23  ;;  %v308_v28 = vmax.f32 %v278_v24, 0.0 }
 0x14b   :  { %v324_v29 = vmax.f32 %v315_v22, %v323_v26  ;;  %v341_v30 = vrot.slane %v318_v27, 4  ;;  %v317_v31 = vmul.f32 %v314_v12, %v308_v28  ;;  %v575_v32 = vpop.f32.mrf.mxu0  ;;  %v331_v34 = vrot.slane %v330_v25, 2 }
 0x14c   :  { %v293_v33 = vadd.f32 %v575_v32, %v492_v9 }
 0x14d   :  { %v325_v35 = vrot.slane %v324_v29, 2  ;;  %v335_v36 = vrot.slane %v317_v31, 4  ;;  %v287_v37 = vpop.f32.mrf.mxu0  ;;  %v342_v38 = vmax.f32 %v318_v27, %v341_v30  ;;  %v332_v46 = vmax.f32 %v330_v25, %v331_v34  ;;  %v493_v34 = vld [vmem:[%s964_s5] ss:$0 sm:$0xff] }
 0x14e   :  { %v311_v39 = vmax.f32 %v293_v33, 0.0  ;;  %v288_v40 = vadd.f32 %v492_v9, %v287_v37 }
 0x14f   :  { %v336_v41 = vmax.f32 %v317_v31, %v335_v36  ;;  %v326_v42 = vmax.f32 %v324_v29, %v325_v35  ;;  %v343_v48 = vrot.slane %v342_v38, 2  ;;  %v333_v59 = vrot.slane %v332_v46, 1 }
 0x150   :  { %v320_v43 = vmul.f32 %v314_v12, %v311_v39  ;;  %v310_v44 = vmax.f32 %v288_v40, 0.0  ;;  %v578_v45 = vpop.f32.mrf.mxu0 }
 0x151   :  { %v337_v47 = vrot.slane %v336_v41, 2  ;;  %v303_v51 = vadd.f32 %v578_v45, %v492_v9  ;;  %v327_v55 = vrot.slane %v326_v42, 1  ;;  %v344_v62 = vmax.f32 %v342_v38, %v343_v48 }
 0x152   :  { %v353_v49 = vrot.slane %v320_v43, 4  ;;  %v319_v50 = vmul.f32 %v314_v12, %v310_v44  ;;  %v297_v52 = vpop.f32.mrf.mxu0  ;;  %v334_v6 = vmax.f32 %v332_v46, %v333_v59 }
 0x153   :  { %v338_v53 = vmax.f32 %v336_v41, %v337_v47  ;;  %v298_v54 = vadd.f32 %v492_v9, %v297_v52  ;;  %v313_v58 = vmax.f32 %v303_v51, 0.0  ;;  %v328_v3 = vmax.f32 %v326_v42, %v327_v55 }
 0x154   :  { %v354_v56 = vmax.f32 %v320_v43, %v353_v49  ;;  %v347_v57 = vrot.slane %v319_v50, 4  ;;  %v345_v9 = vrot.slane %v344_v62, 1 }
 0x155   :  { %v339_v60 = vrot.slane %v338_v53, 1  ;;  %v312_v61 = vmax.f32 %v298_v54, 0.0  ;;  %v322_v1 = vmul.f32 %v314_v12, %v313_v58  ;;  %v403_v15 = vsel %vm402_vm4, %v334_v6, %v328_v3 }
 0x156   :  { %v355_v63 = vrot.slane %v354_v56, 2  ;;  %v348_v0 = vmax.f32 %v319_v50, %v347_v57 }
 0x157   :  { %v321_v2 = vmul.f32 %v314_v12, %v312_v61  ;;  %v365_v5 = vrot.slane %v322_v1, 4  ;;  %v340_v7 = vmax.f32 %v338_v53, %v339_v60  ;;  %v346_v12 = vmax.f32 %v344_v62, %v345_v9 }
 0x158   :  { %v349_v4 = vrot.slane %v348_v0, 2  ;;  %v356_v10 = vmax.f32 %v354_v56, %v355_v63 }
 0x159   :  { %v359_v8 = vrot.slane %v321_v2, 4  ;;  %v366_v13 = vmax.f32 %v322_v1, %v365_v5  ;;  %v405_v19 = vsel %vm404_vm5, %v340_v7, %v403_v15 }
 0x15a   :  { %v350_v11 = vmax.f32 %v348_v0, %v349_v4  ;;  %v357_v20 = vrot.slane %v356_v10, 1  ;;  %v407_v25 = vsel %vm406_vm6, %v346_v12, %v405_v19 }
 0x15b   :  { %v360_v14 = vmax.f32 %v321_v2, %v359_v8  ;;  %v367_v17 = vrot.slane %v366_v13, 2 }
 0x15c   :  { %v351_v16 = vrot.slane %v350_v11, 1  ;;  %v358_v28 = vmax.f32 %v356_v10, %v357_v20 }
 0x15d   :  { %v361_v18 = vrot.slane %v360_v14, 2  ;;  %v368_v22 = vmax.f32 %v366_v13, %v367_v17 }
 0x15e   :  { %v352_v21 = vmax.f32 %v350_v11, %v351_v16 }
 0x15f   :  { %v362_v23 = vmax.f32 %v360_v14, %v361_v18  ;;  %v369_v24 = vrot.slane %v368_v22, 1 }
 0x160   :  { %v409_v27 = vsel %vm408_vm7, %v352_v21, %v407_v25 }
 0x161   :  { %v363_v26 = vrot.slane %v362_v23, 1  ;;  %v370_v30 = vmax.f32 %v368_v22, %v369_v24  ;;  %v411_v31 = vsel %vm410_vm8, %v358_v28, %v409_v27 }
 0x163   :  { %v364_v29 = vmax.f32 %v362_v23, %v363_v26 }
 0x165   :  { %v413_v32 = vsel %vm412_vm9, %v364_v29, %v411_v31 }
 0x166   :  { %v415_v33 = vsel %vm414_vm10, %v370_v30, %v413_v32 }
 0x167   :  { %612 = vmatmul.mubr.f32.vlgmr.msra.gmra.mxu1 %v415_v33 }
 0x227   :  { %v483_v35 = vpop.f32.mrf.mxu1 }
 0x228   :  { %v484_v36 = vadd.f32 %v493_v34, %v483_v35 }
 0x229   :  { %v613_v37 = vpop.f32.mrf.mxu1 }
 0x22a   :  { %487 = vst [vmem:[%s965_s6] sm:$0xff] %v484_v36 }

</bundles_post_ra>
